<compile_context>
chip_gen: v5e
topology: v5e:2x2
jax: 0.10.0
libtpu: 0.0.40
codegen_flags: <defaults>
</compile_context>

<pallas_src>
import jax
import jax.numpy as jnp
from jax.experimental import pallas as pl
from jax.experimental.pallas import tpu as pltpu

_NEG_BIG = -1e30  # finite "-inf": exp underflows to exactly 0 against any live score
_DEFAULT_VMEM_CAP = 128 * 1024 * 1024


def _round_up(x, m):
    return (x + m - 1) // m * m


def _vmem_capacity_bytes():
    """Physical VMEM per TensorCore (128 MiB on v5e/v6e, 64 MiB on v7x)."""
    try:
        info = pltpu.get_tpu_info()
        cap = getattr(info, "vmem_capacity_bytes", None)
        if cap:
            return int(cap)
    except Exception:
        pass
    return _DEFAULT_VMEM_CAP


# ---------------------------------------------------------------------------
# Fused kernel (default): projection + scores + mask + softmax + context.
# ---------------------------------------------------------------------------
def _fused_attention_kernel(tgt_ref, w_ref, src_ref, bias_ref, out_ref):
    # tgt_ref : (Bb, Ttp, Hp)  target hidden states (native dtype)
    # w_ref   : (Hp, Hp)       nn.Linear weight in PyTorch (out, in) layout,
    #                          grid-invariant (same block every grid step)
    # src_ref : (Bb, Tsp, Hp)  source hidden states (native dtype)
    # bias_ref: (Bb, 1,  Tsp)  additive mask bias (0 keep / -1e30 masked), f32
    # out_ref : (Bb, Ttp, Hp)  context vectors
    tgt = tgt_ref[...]
    s = src_ref[...]
    Bb, Ttp, Hp = tgt.shape  # static block dims

    # query = tgt @ W^T as one 2D MXU matmul over M = Bb*Ttp rows.
    # NT contraction (x dim 1 with W dim 1) -> no transposed copy of W.
    # Ttp is a sublane multiple, so the leading-dim collapse is tile-aligned.
    q = jax.lax.dot_general(
        tgt.reshape(Bb * Ttp, Hp), w_ref[...],
        dimension_numbers=(((1,), (1,)), ((), ())),
        preferred_element_type=jnp.float32,
    ).reshape(Bb, Ttp, Hp).astype(s.dtype)

    # scores[b,t,k] = sum_h q[b,t,h] * s[b,k,h]  (batched NT matmul, f32 acc)
    scores = jnp.einsum('bqh,bkh->bqk', q, s, preferred_element_type=jnp.float32)
    scores = scores + bias_ref[...]              # mask as additive bias (VALU add)

    # softmax over source positions
    m = jnp.max(scores, axis=-1, keepdims=True)
    p = jnp.exp(scores - m)
    denom = jnp.sum(p, axis=-1, keepdims=True)
    attn = p * pl.reciprocal(denom, approx=True)  # EUP reciprocal, frees VALU

    # context = attn @ h_src (probabilities cast back to src dtype for the MXU)
    ctx = jnp.einsum('bqk,bkh->bqh', attn.astype(s.dtype), s,
                     preferred_element_type=jnp.float32)
    out_ref[...] = ctx.astype(out_ref.dtype)


# ---------------------------------------------------------------------------
# Two-pass fallback (very large hidden size: weight does not fit VMEM).
# ---------------------------------------------------------------------------
def _linear_nt_kernel(x_ref, w_ref, q_ref):
    # x_ref: (tm, Hp), w_ref: (tn, Hp)  ->  q_ref: (tm, tn) = x @ w_block^T
    q_ref[...] = jax.lax.dot_general(
        x_ref[...], w_ref[...],
        dimension_numbers=(((1,), (1,)), ((), ())),
        preferred_element_type=jnp.float32,
    ).astype(q_ref.dtype)


def _attention_kernel(q_ref, src_ref, bias_ref, out_ref):
    # Same as the fused kernel, minus the in-kernel projection.
    q = q_ref[...]
    s = src_ref[...]
    scores = jnp.einsum('bqh,bkh->bqk', q, s, preferred_element_type=jnp.float32)
    scores = scores + bias_ref[...]
    m = jnp.max(scores, axis=-1, keepdims=True)
    p = jnp.exp(scores - m)
    denom = jnp.sum(p, axis=-1, keepdims=True)
    attn = p * pl.reciprocal(denom, approx=True)
    ctx = jnp.einsum('bqk,bkh->bqh', attn.astype(s.dtype), s,
                     preferred_element_type=jnp.float32)
    out_ref[...] = ctx.astype(out_ref.dtype)


# ---------------------------------------------------------------------------
# Tile-size heuristics.
# ---------------------------------------------------------------------------
def _choose_m_tile(m, sub, cap=512):
    """Row tile for the projection GEMM: multiple of the sublane count, <= cap,
    preferring an exact divisor of m and >= 2 grid steps (v7x megacore)."""
    if m <= sub:
        return m
    tm = min(cap, _round_up(pl.cdiv(m, 2), sub))
    for t in range(tm, sub - 1, -sub):
        if m % t == 0:
            return t
    return tm  # ragged trailing block: OOB rows read, outputs masked on writeback


def _choose_n_tile(n, cap=512):
    """Output-feature tile: v6e/v7x MXUs are 256 wide, prefer 256 multiples."""
    if n <= cap:
        return n
    for t in (512, 256, 384, 128):
        if n % t == 0:
            return t
    return 256


def _choose_batch_block(b, tsp, ttp, hp, itemsize, target_bytes):
    """Batch elements per grid step, sized against a per-step VMEM slab target."""
    # Streamed operands (tgt, src, out, bias) are double-buffered by Pallas (2x);
    # the f32 intermediates (q, scores, probs) live once inside the compute.
    streamed = 2 * ((2 * ttp * hp + tsp * hp) * itemsize + tsp * 4)
    live_f32 = (ttp * hp + 2 * ttp * tsp) * 4
    per_batch = int((streamed + live_f32) * 1.25)       # ~25% headroom
    bb = max(1, min(b, target_bytes // max(per_batch, 1)))
    # Keep >=2 grid steps for megacore sharding when per-step work is non-trivial.
    while bb > 1 and b // bb < 2 and per_batch * bb > (1 << 20):
        bb //= 2
    while b % bb != 0:                                   # keep the grid exact
        bb -= 1
    return bb


# ---------------------------------------------------------------------------
# Wrapper.
# ---------------------------------------------------------------------------
def attention_pallas(w, h_src, h_t_tgt, mask=None, *, force_two_pass=False):
    """w: (H, H) nn.Linear weight (out, in); h_src: (B, Ts, H);
    h_t_tgt: (B, Tt, H); mask: (B, Ts) bool (True = masked) or None."""
    B, Ts, H = h_src.shape
    _, Tt, _ = h_t_tgt.shape
    dt = h_t_tgt.dtype
    itemsize = jnp.dtype(dt).itemsize
    sub = 8 if itemsize >= 4 else (16 if itemsize == 2 else 32)

    # Generation-aware VMEM budgeting (v7x 64 MiB/TC vs v5e/v6e 128 MiB).
    vmem_cap = _vmem_capacity_bytes()
    vmem_limit = min(int(vmem_cap * 0.625), 48 * 1024 * 1024)
    slab_target = (2 if vmem_cap <= 64 * 1024 * 1024 else 4) * 1024 * 1024

    # Lane/sublane-dense padding. Zero padding of the hidden dim is exact
    # (padded columns contribute 0 to every contraction); padded source
    # positions are masked via the bias; padded target rows are sliced away.
    Hp = _round_up(H, 128)     # lane dim of every operand
    Tsp = _round_up(Ts, 128)   # lane dim of scores/bias, sublane dim of h_src
    Ttp = _round_up(Tt, sub)   # sublane dim of query/scores/output
    if Hp != H or Ttp != Tt:
        h_t_tgt = jnp.pad(h_t_tgt, ((0, 0), (0, Ttp - Tt), (0, Hp - H)))
    if Hp != H or Tsp != Ts:
        h_src = jnp.pad(h_src, ((0, 0), (0, Tsp - Ts), (0, Hp - H)))
    if Hp != H:
        w = jnp.pad(w, ((0, Hp - H), (0, Hp - H)))

    # Additive mask bias (0 keep, -1e30 masked). Finite fill matches -inf
    # masked_fill exactly whenever a row has >=1 live position, and avoids NaN
    # (gives a uniform row) when a row is fully masked. Padded source columns
    # are always masked out.
    if mask is None:
        mask_full = jnp.zeros((B, Ts), dtype=bool)
    else:
        mask_full = mask.astype(bool)
    if Tsp != Ts:
        mask_full = jnp.pad(mask_full, ((0, 0), (0, Tsp - Ts)),
                            constant_values=True)
    bias = jnp.where(mask_full, _NEG_BIG, 0.0).astype(jnp.float32).reshape(B, 1, Tsp)

    Bblk = _choose_batch_block(B, Tsp, Ttp, Hp, itemsize, slab_target)
    # TODO(synk): for very large Ts add a Ts grid axis + online (flash-style)
    # softmax so the (Bblk, Ttp, Tsp) f32 intermediate never forces Bblk -> 1.

    w_bytes = Hp * Hp * jnp.dtype(w.dtype).itemsize
    fuse = (not force_two_pass) and (2 * w_bytes <= vmem_limit // 3)

    cp = pltpu.CompilerParams(dimension_semantics=("parallel",),
                              vmem_limit_bytes=vmem_limit)

    if fuse:
        # -------- single fused pass: no HBM round trip for the query tensor ----
        ctx_p = pl.pallas_call(
            _fused_attention_kernel,
            out_shape=jax.ShapeDtypeStruct((B, Ttp, Hp), dt),
            grid_spec=pltpu.PrefetchScalarGridSpec(
                num_scalar_prefetch=0,
                grid=(B // Bblk,),
                in_specs=[
                    pl.BlockSpec((Bblk, Ttp, Hp), lambda b: (b, 0, 0)),  # h_t_tgt
                    pl.BlockSpec((Hp, Hp), lambda b: (0, 0)),            # weight (grid-invariant)
                    pl.BlockSpec((Bblk, Tsp, Hp), lambda b: (b, 0, 0)),  # h_src
                    pl.BlockSpec((Bblk, 1, Tsp), lambda b: (b, 0, 0)),   # mask bias
                ],
                out_specs=pl.BlockSpec((Bblk, Ttp, Hp), lambda b: (b, 0, 0)),
            ),
            compiler_params=cp,
        )(h_t_tgt, w, h_src, bias)
        return ctx_p[:, :Tt, :H]

    # -------- fallback pass 1: projection GEMM, M- and N-tiled -----------------
    M = B * Ttp
    x2 = h_t_tgt.reshape(M, Hp)
    tm = _choose_m_tile(M, sub)
    tn = _choose_n_tile(Hp)
    query = pl.pallas_call(
        _linear_nt_kernel,
        out_shape=jax.ShapeDtypeStruct((M, Hp), dt),
        grid_spec=pltpu.PrefetchScalarGridSpec(
            num_scalar_prefetch=0,
            grid=(pl.cdiv(M, tm), pl.cdiv(Hp, tn)),
            in_specs=[
                pl.BlockSpec((tm, Hp), lambda i, n: (i, 0)),   # activations
                pl.BlockSpec((tn, Hp), lambda i, n: (n, 0)),   # weight row-block
            ],
            out_specs=pl.BlockSpec((tm, tn), lambda i, n: (i, n)),
        ),
        compiler_params=pltpu.CompilerParams(
            dimension_semantics=("parallel", "parallel"),
            vmem_limit_bytes=vmem_limit),
    )(x2, w)
    query = query.reshape(B, Ttp, Hp)

    # -------- fallback pass 2: attention over blocks of batch elements ---------
    ctx_p = pl.pallas_call(
        _attention_kernel,
        out_shape=jax.ShapeDtypeStruct((B, Ttp, Hp), dt),
        grid_spec=pltpu.PrefetchScalarGridSpec(
            num_scalar_prefetch=0,
            grid=(B // Bblk,),
            in_specs=[
                pl.BlockSpec((Bblk, Ttp, Hp), lambda b: (b, 0, 0)),  # query
                pl.BlockSpec((Bblk, Tsp, Hp), lambda b: (b, 0, 0)),  # h_src
                pl.BlockSpec((Bblk, 1, Tsp), lambda b: (b, 0, 0)),   # mask bias
            ],
            out_specs=pl.BlockSpec((Bblk, Ttp, Hp), lambda b: (b, 0, 0)),
        ),
        compiler_params=cp,
    )(query, h_src, bias)
    return ctx_p[:, :Tt, :H]


def attention_reference(w, h_src, h_t_tgt, mask=None):
    query = jnp.einsum("bth,oh->bto", h_t_tgt, w)          # x @ W^T
    scores = jnp.einsum("bth,bsh->bts", query, h_src)
    if mask is not None:
        scores = jnp.where(mask[:, None, :], -jnp.inf, scores)
    attn = jax.nn.softmax(scores, axis=-1)
    return jnp.einsum("bts,bsh->bth", attn, h_src)


if __name__ == "__main__":
    key = jax.random.PRNGKey(0)
    B, T_src, T_tgt, H = 2, 8, 8, 32

    k_w, k_src, k_tgt = jax.random.split(key, 3)
    # Deterministic parameter init (nn.Linear(hidden, hidden, bias=False) weight).
    w = jax.random.normal(k_w, (H, H), dtype=jnp.float32) * 0.1
    h_src = jax.random.normal(k_src, (B, T_src, H), dtype=jnp.float32)
    h_t_tgt = jax.random.normal(k_tgt, (B, T_tgt, H), dtype=jnp.float32)
    # Mask out trailing source positions of batch element 1 (True = masked).
    mask = jnp.arange(T_src)[None, :] >= jnp.array([T_src, T_src - 3])[:, None]

    ref = attention_reference(w, h_src, h_t_tgt, mask)

    # Fused (single-pass) kernel — the default path.
    out = jax.block_until_ready(attention_pallas(w, h_src, h_t_tgt, mask))
    assert out.shape == (B, T_tgt, H)
    # Tolerance accounts for the EUP approximate reciprocal in the softmax.
    assert jnp.allclose(out, ref, atol=5e-3, rtol=5e-3), "fused kernel mismatch"

    # Two-pass fallback (used when the weight is too large to keep in VMEM).
    out2 = jax.block_until_ready(
        attention_pallas(w, h_src, h_t_tgt, mask, force_two_pass=True))
    assert jnp.allclose(out2, ref, atol=5e-3, rtol=5e-3), "two-pass kernel mismatch"

    # No-mask path.
    out3 = jax.block_until_ready(attention_pallas(w, h_src, h_t_tgt, None))
    ref3 = attention_reference(w, h_src, h_t_tgt, None)
    assert jnp.allclose(out3, ref3, atol=5e-3, rtol=5e-3), "no-mask mismatch"

    print("KERNEL_OK")
</pallas_src>

<mosaic_0001>
module attributes {stable_mosaic.version = 11 : i64} {
  func.func @_fused_attention_kernel(%arg0: i32, %arg1: memref<2x8x128xf32, #tpu.memory_space<vmem>>, %arg2: memref<128x128xf32, #tpu.memory_space<vmem>>, %arg3: memref<2x128x128xf32, #tpu.memory_space<vmem>>, %arg4: memref<2x1x128xf32, #tpu.memory_space<vmem>>, %arg5: memref<2x8x128xf32, #tpu.memory_space<vmem>>) attributes {dimension_semantics = [#tpu.dimension_semantics<parallel>], iteration_bounds = array<i64: 1>, scalar_prefetch = 0 : i64, scratch_operands = 0 : i64, tpu.core_type = #tpu.core_type<tc>, window_params = [{transform_indices = @transform_0, window_bounds = array<i64: 2, 8, 128>}, {pipeline_mode = #tpu.pipeline_mode<synchronous>, transform_indices = @transform_1, window_bounds = array<i64: 128, 128>}, {transform_indices = @transform_2, window_bounds = array<i64: 2, 128, 128>}, {transform_indices = @transform_3, window_bounds = array<i64: 2, 1, 128>}, {transform_indices = @transform_4, window_bounds = array<i64: 2, 8, 128>}]} {
    %c0 = arith.constant 0 : index
    %c0_0 = arith.constant 0 : index
    %c0_1 = arith.constant 0 : index
    %0 = vector.load %arg1[%c0, %c0_0, %c0_1] : memref<2x8x128xf32, #tpu.memory_space<vmem>>, vector<2x8x128xf32>
    %c0_2 = arith.constant 0 : index
    %c0_3 = arith.constant 0 : index
    %c0_4 = arith.constant 0 : index
    %1 = vector.load %arg3[%c0_2, %c0_3, %c0_4] : memref<2x128x128xf32, #tpu.memory_space<vmem>>, vector<2x128x128xf32>
    %2 = vector.shape_cast %0 : vector<2x8x128xf32> to vector<16x128xf32>
    %c0_5 = arith.constant 0 : index
    %c0_6 = arith.constant 0 : index
    %3 = vector.load %arg2[%c0_5, %c0_6] : memref<128x128xf32, #tpu.memory_space<vmem>>, vector<128x128xf32>
    %cst = arith.constant dense<0.000000e+00> : vector<16x128xf32>
    %4 = tpu.matmul %2, %3, %cst {dimension_numbers = #tpu.dot_dimension_numbers<[1], [1], [0], [0], [0, 0, 1, 0], [], []>} : vector<16x128xf32>, vector<128x128xf32>, vector<16x128xf32> -> vector<16x128xf32>
    %5 = vector.shape_cast %4 : vector<16x128xf32> to vector<2x8x128xf32>
    "tpu.trace_start"() <{level = 10 : i32, message = "bqh,bkh->bqk"}> : () -> ()
    %cst_7 = arith.constant dense<0.000000e+00> : vector<2x8x128xf32>
    %6 = tpu.matmul %5, %1, %cst_7 {dimension_numbers = #tpu.dot_dimension_numbers<[2], [2], [1], [1], [0, 0, 0, 1, 1, 1], [0], [0]>} : vector<2x8x128xf32>, vector<2x128x128xf32>, vector<2x8x128xf32> -> vector<2x8x128xf32>
    "tpu.trace_stop"() : () -> ()
    %c0_8 = arith.constant 0 : index
    %c0_9 = arith.constant 0 : index
    %c0_10 = arith.constant 0 : index
    %7 = vector.load %arg4[%c0_8, %c0_9, %c0_10] : memref<2x1x128xf32, #tpu.memory_space<vmem>>, vector<2x1x128xf32>
    %8 = vector.broadcast %7 : vector<2x1x128xf32> to vector<2x8x128xf32>
    %9 = arith.addf %6, %8 : vector<2x8x128xf32>
    %cst_11 = arith.constant dense<0xFF800000> : vector<2x8xf32>
    %10 = vector.multi_reduction <maximumf>, %9, %cst_11 [2] : vector<2x8x128xf32> to vector<2x8xf32>
    %11 = vector.shape_cast %10 : vector<2x8xf32> to vector<2x8x1xf32>
    %12 = vector.broadcast %11 : vector<2x8x1xf32> to vector<2x8x128xf32>
    %13 = arith.subf %9, %12 : vector<2x8x128xf32>
    %14 = math.exp %13 : vector<2x8x128xf32>
    %cst_12 = arith.constant dense<0.000000e+00> : vector<2x8xf32>
    %15 = vector.multi_reduction <add>, %14, %cst_12 [2] : vector<2x8x128xf32> to vector<2x8xf32>
    %16 = vector.shape_cast %15 : vector<2x8xf32> to vector<2x8x1xf32>
    %17 = tpu.reciprocal %16 {approx = true} : vector<2x8x1xf32> -> vector<2x8x1xf32>
    %18 = vector.broadcast %17 : vector<2x8x1xf32> to vector<2x8x128xf32>
    %19 = arith.mulf %14, %18 : vector<2x8x128xf32>
    "tpu.trace_start"() <{level = 10 : i32, message = "bqk,bkh->bqh"}> : () -> ()
    %cst_13 = arith.constant dense<0.000000e+00> : vector<2x8x128xf32>
    %20 = tpu.matmul %19, %1, %cst_13 {dimension_numbers = #tpu.dot_dimension_numbers<[2], [1], [1], [2], [0, 0, 0, 1, 1, 2], [0], [0]>} : vector<2x8x128xf32>, vector<2x128x128xf32>, vector<2x8x128xf32> -> vector<2x8x128xf32>
    "tpu.trace_stop"() : () -> ()
    %c0_14 = arith.constant 0 : index
    %c0_15 = arith.constant 0 : index
    %c0_16 = arith.constant 0 : index
    %21 = vector.load %arg5[%c0_14, %c0_15, %c0_16] : memref<2x8x128xf32, #tpu.memory_space<vmem>>, vector<2x8x128xf32>
    tpu.vector_store %arg5[%c0_14, %c0_15, %c0_16], %20 {strides = array<i32>} : memref<2x8x128xf32, #tpu.memory_space<vmem>>, vector<2x8x128xf32>,
    return
  }
  func.func @transform_0(%arg0: i32) -> (i32, i32, i32) {
    %c0_i32 = arith.constant 0 : i32
    %c0_i32_0 = arith.constant 0 : i32
    %c0_i32_1 = arith.constant 0 : i32
    return %arg0, %c0_i32, %c0_i32_0 : i32, i32, i32
  }
  func.func @transform_1(%arg0: i32) -> (i32, i32) {
    %c0_i32 = arith.constant 0 : i32
    %c0_i32_0 = arith.constant 0 : i32
    %c0_i32_1 = arith.constant 0 : i32
    return %c0_i32, %c0_i32_0 : i32, i32
  }
  func.func @transform_2(%arg0: i32) -> (i32, i32, i32) {
    %c0_i32 = arith.constant 0 : i32
    %c0_i32_0 = arith.constant 0 : i32
    %c0_i32_1 = arith.constant 0 : i32
    return %arg0, %c0_i32, %c0_i32_0 : i32, i32, i32
  }
  func.func @transform_3(%arg0: i32) -> (i32, i32, i32) {
    %c0_i32 = arith.constant 0 : i32
    %c0_i32_0 = arith.constant 0 : i32
    %c0_i32_1 = arith.constant 0 : i32
    return %arg0, %c0_i32, %c0_i32_0 : i32, i32, i32
  }
  func.func @transform_4(%arg0: i32) -> (i32, i32, i32) {
    %c0_i32 = arith.constant 0 : i32
    %c0_i32_0 = arith.constant 0 : i32
    %c0_i32_1 = arith.constant 0 : i32
    return %arg0, %c0_i32, %c0_i32_0 : i32, i32, i32
  }
}

</mosaic_0001>

<bundles_post_ra>
// kernel: tpu_custom_call.1
= control target key start
LH: loop header
LB: loop body
LE: loop exit
PB: predicated region body
PF: predicated region fallthrough
CT: control target
= control target key end

     0   :  { %9 = vsyncpa [#allocation3], 0  ;;  %s453_s0 = inlined_call_operand.hbm [shape: f32[2,8,128], index: 0, kind: input, shape index: {}]   ;;  %s454_s1 = inlined_call_operand.hbm [shape: f32[128,128], index: 1, kind: input, shape index: {}]   ;;  %s455_s2 = inlined_call_operand.hbm [shape: f32[2,128,128], index: 2, kind: input, shape index: {}]   ;;  %s456_s3 = inlined_call_operand.vmem [shape: f32[2,1,128], index: 3, kind: input, shape index: {}]   ;;  %s457_s4 = inlined_call_operand.hbm [shape: f32[2,8,128], index: 4, kind: output, shape index: {}]  }
   0x1   :  { %10 = vsyncpa [#allocation6], 0 }
   0x2   :  { %11 = vsyncpa [#allocation4], 0  ;;  %s29_s17 = sshll.u32 %s454_s1, 4  ;;  %s384_s18 = smov [#allocation5]   ;;  %s30_s17 = int_to_ptr.hbm [resolvable:$true] %s29_s17 }
   0x3   :  { %s31_s19 = sshll.u32 %s384_s18, 4  ;;  %s16_s22 = sshll.u32 %s453_s0, 4  ;;  %s32_s19 = int_to_ptr.vmem [resolvable:$true] %s31_s19  ;;  %s17_s22 = int_to_ptr.hbm [resolvable:$true] %s16_s22 }
   0x4   :  { %s385_s23 = smov 128   ;;  %s386_s24 = smov 8  }
   0x5   :  { %37 = dma.hbm_to_vmem [thread:$0]  %s30_s17, 2048, %s32_s19, [#allocation6], %s385_s23, %s385_s23, %s386_s24  }
   0x6   :  { %s387_s25 = smov [#allocation2]   ;;  %s42_s1 = sshll.u32 %s455_s2, 4  ;;  %s43_s1 = int_to_ptr.hbm [resolvable:$true] %s42_s1 }
   0x7   :  { %s18_s26 = sshll.u32 %s387_s25, 4  ;;  %s388_s0 = smov [#allocation7]   ;;  %s19_s26 = int_to_ptr.vmem [resolvable:$true] %s18_s26 }
   0x8   :  { %24 = dma.hbm_to_vmem [thread:$0]  %s17_s22, 256, %s19_s26, [#allocation3], %s385_s23, %s385_s23, %s386_s24  }
   0x9   :  { %s44_s29 = sshll.u32 %s388_s0, 4  ;;  %s45_s29 = int_to_ptr.vmem [resolvable:$true] %s44_s29 }
   0xa   :  { %50 = dma.hbm_to_vmem [thread:$0]  %s43_s1, 4096, %s45_s29, [#allocation6], %s385_s23, %s385_s23, %s386_s24  }
   0xb   :  { %378 = dma.done.wait [#allocation3], 256  }
   0xc   :  { %379 = vsyncadd [#allocation3], 4294967040 }
   0xd   :  { %380 = dma.done.wait [#allocation6], 6144  }
   0xe   :  { %381 = vsyncadd [#allocation6], 4294961152  ;;  %v114_v0 = vld [vmem:[#allocation5 + $0x78] sm:$0xff]  ;;  %v113_v1 = vld [vmem:[#allocation5 + $0x70] sm:$0xff]  ;;  %s252_s10 = sshll.u32 %s457_s4, 4  ;;  %s253_s10 = int_to_ptr.hbm [resolvable:$true] %s252_s10 }
   0xf   :  { %115 = vmatpush.xpose.msra.mxu0 %v114_v0  ;;  %v112_v2 = vld [vmem:[#allocation5 + $0x68] sm:$0xff]  ;;  %v111_v3 = vld [vmem:[#allocation5 + $0x60] sm:$0xff]  ;;  %v110_v4 = vld [vmem:[#allocation5 + $0x58] sm:$0xff] }
  0x10   :  { %v109_v5 = vld [vmem:[#allocation5 + $0x50] sm:$0xff]  ;;  %v108_v6 = vld [vmem:[#allocation5 + $0x48] sm:$0xff]  ;;  %v107_v7 = vld [vmem:[#allocation5 + $0x40] sm:$0xff] }
  0x11   :  { %v106_v8 = vld [vmem:[#allocation5 + $0x38] sm:$0xff]  ;;  %v105_v9 = vld [vmem:[#allocation5 + $0x30] sm:$0xff]  ;;  %v104_v10 = vld [vmem:[#allocation5 + $0x28] sm:$0xff] }
  0x12   :  { %v82_v11 = vld [vmem:[#allocation7 + $0x78] sm:$0xff]  ;;  %v103_v13 = vld [vmem:[#allocation5 + $0x20] sm:$0xff]  ;;  %v81_v14 = vld [vmem:[#allocation7 + $0x70] sm:$0xff] }
  0x13   :  { %116 = vmatpush.xpose.msra.mxu0 %v113_v1  ;;  %146 = vmatpush.xpose.msra.mxu1 %v82_v11  ;;  %v433_v12 = vld [vmem:[#allocation7 + $0xf8] sm:$0xff]  ;;  %v436_v15 = vld [vmem:[#allocation7 + $0xf0] sm:$0xff]  ;;  %v80_v16 = vld [vmem:[#allocation7 + $0x68] sm:$0xff] }
  0x14   :  { %166 = vmatpush.xpose.msra.mxu2 %v433_v12  ;;  %204 = vmatpush.msra.mxu3 %v82_v11  ;;  %v102_v17 = vld [vmem:[#allocation5 + $0x18] sm:$0xff]  ;;  %v79_v18 = vld [vmem:[#allocation7 + $0x60] sm:$0xff]  ;;  %v96_v19 = vld [vmem:[#allocation7 + $0xe8] sm:$0xff] }
  0x15   :  { %v78_v20 = vld [vmem:[#allocation7 + $0x58] sm:$0xff]  ;;  %v101_v21 = vld [vmem:[#allocation5 + $0x10] sm:$0xff]  ;;  %v95_v23 = vld [vmem:[#allocation7 + $0xe0] sm:$0xff] }
  0x16   :  { %205 = vmatpush.msra.mxu3 %v81_v14  ;;  %v77_v22 = vld [vmem:[#allocation7 + $0x50] sm:$0xff]  ;;  %v76_v24 = vld [vmem:[#allocation7 + $0x48] sm:$0xff]  ;;  %v94_v26 = vld [vmem:[#allocation7 + $0xd8] sm:$0xff] }
  0x17   :  { %117 = vmatpush.xpose.msra.mxu0 %v112_v2  ;;  %147 = vmatpush.xpose.msra.mxu1 %v81_v14  ;;  %v100_v25 = vld [vmem:[#allocation5 + $0x8] sm:$0xff]  ;;  %v75_v27 = vld [vmem:[#allocation7 + $0x40] sm:$0xff]  ;;  %v74_v28 = vld [vmem:[#allocation7 + $0x38] sm:$0xff] }
  0x18   :  { %167 = vmatpush.xpose.msra.mxu2 %v436_v15  ;;  %206 = vmatpush.msra.mxu3 %v80_v16  ;;  %v99_v29 = vld [vmem:[#allocation5] sm:$0xff]  ;;  %v93_v30 = vld [vmem:[#allocation7 + $0xd0] sm:$0xff]  ;;  %v72_v33 = vld [vmem:[#allocation7 + $0x28] sm:$0xff] }
  0x19   :  { %v73_v31 = vld [vmem:[#allocation7 + $0x30] sm:$0xff]  ;;  %v92_v34 = vld [vmem:[#allocation7 + $0xc8] sm:$0xff]  ;;  %v71_v35 = vld [vmem:[#allocation7 + $0x20] sm:$0xff] }
  0x1a   :  { %207 = vmatpush.msra.mxu3 %v79_v18  ;;  %v65_v32 = vld [vmem:[#allocation2] sm:$0xff]  ;;  %v70_v36 = vld [vmem:[#allocation7 + $0x18] sm:$0xff]  ;;  %v91_v37 = vld [vmem:[#allocation7 + $0xc0] sm:$0xff] }
  0x1b   :  { %118 = vmatpush.xpose.msra.mxu0 %v111_v3  ;;  %148 = vmatpush.xpose.msra.mxu1 %v80_v16  ;;  %v69_v38 = vld [vmem:[#allocation7 + $0x10] sm:$0xff]  ;;  %v66_v39 = vld [vmem:[#allocation2 + $0x8] sm:$0xff]  ;;  %v68_v40 = vld [vmem:[#allocation7 + $0x8] sm:$0xff] }
  0x1c   :  { %168 = vmatpush.xpose.msra.mxu2 %v96_v19  ;;  %208 = vmatpush.msra.mxu3 %v78_v20  ;;  %v90_v41 = vld [vmem:[#allocation7 + $0xb8] sm:$0xff]  ;;  %v67_v42 = vld [vmem:[#allocation7] sm:$0xff]  ;;  %v89_v43 = vld [vmem:[#allocation7 + $0xb0] sm:$0xff] }
  0x1d   :  { %v88_v44 = vld [vmem:[#allocation7 + $0xa8] sm:$0xff]  ;;  %v87_v45 = vld [vmem:[#allocation7 + $0xa0] sm:$0xff]  ;;  %v86_v46 = vld [vmem:[#allocation7 + $0x98] sm:$0xff] }
  0x1e   :  { %209 = vmatpush.msra.mxu3 %v77_v22  ;;  %v85_v47 = vld [vmem:[#allocation7 + $0x90] sm:$0xff]  ;;  %v84_v48 = vld [vmem:[#allocation7 + $0x88] sm:$0xff]  ;;  %v83_v49 = vld [vmem:[#allocation7 + $0x80] sm:$0xff] }
  0x1f   :  { %119 = vmatpush.xpose.msra.mxu0 %v110_v4  ;;  %149 = vmatpush.xpose.msra.mxu1 %v79_v18  ;;  %v272_v52 = vld [vmem:[%s456_s3] ss:$0 sm:$0xff]  ;;  %v273_v55 = vld [vmem:[%s456_s3 + $0x1] ss:$0 sm:$0xff]  ;;  %s389_s3 = smov [#allocation8]  }
  0x20   :  { %169 = vmatpush.xpose.msra.mxu2 %v95_v23  ;;  %210 = vmatpush.msra.mxu3 %v76_v24  ;;  %s250_s7 = sshll.u32 %s389_s3, 4  ;;  %s251_s7 = int_to_ptr.vmem [resolvable:$true] %s250_s7 }
  0x22   :  { %211 = vmatpush.msra.mxu3 %v75_v27 }
  0x23   :  { %120 = vmatpush.xpose.msra.mxu0 %v109_v5  ;;  %150 = vmatpush.xpose.msra.mxu1 %v78_v20 }
  0x24   :  { %170 = vmatpush.xpose.msra.mxu2 %v94_v26  ;;  %212 = vmatpush.msra.mxu3 %v74_v28 }
  0x26   :  { %213 = vmatpush.msra.mxu3 %v73_v31 }
  0x27   :  { %121 = vmatpush.xpose.msra.mxu0 %v108_v6  ;;  %151 = vmatpush.xpose.msra.mxu1 %v77_v22 }
  0x28   :  { %171 = vmatpush.xpose.msra.mxu2 %v93_v30  ;;  %214 = vmatpush.msra.mxu3 %v72_v33 }
  0x2a   :  { %215 = vmatpush.msra.mxu3 %v71_v35 }
  0x2b   :  { %122 = vmatpush.xpose.msra.mxu0 %v107_v7  ;;  %152 = vmatpush.xpose.msra.mxu1 %v76_v24 }
  0x2c   :  { %172 = vmatpush.xpose.msra.mxu2 %v92_v34  ;;  %216 = vmatpush.msra.mxu3 %v70_v36 }
  0x2e   :  { %217 = vmatpush.msra.mxu3 %v69_v38 }
  0x2f   :  { %123 = vmatpush.xpose.msra.mxu0 %v106_v8  ;;  %153 = vmatpush.xpose.msra.mxu1 %v75_v27 }
  0x30   :  { %173 = vmatpush.xpose.msra.mxu2 %v91_v37  ;;  %218 = vmatpush.msra.mxu3 %v68_v40 }
  0x32   :  { %219 = vmatpush.msra.mxu3 %v67_v42 }
  0x33   :  { %124 = vmatpush.xpose.msra.mxu0 %v105_v9  ;;  %154 = vmatpush.xpose.msra.mxu1 %v74_v28 }
  0x34   :  { %224 = vmatpush.msrb.mxu3 %v433_v12  ;;  %174 = vmatpush.xpose.msra.mxu2 %v90_v41 }
  0x36   :  { %225 = vmatpush.msrb.mxu3 %v436_v15 }
  0x37   :  { %125 = vmatpush.xpose.msra.mxu0 %v104_v10  ;;  %155 = vmatpush.xpose.msra.mxu1 %v73_v31 }
  0x38   :  { %226 = vmatpush.msrb.mxu3 %v96_v19  ;;  %175 = vmatpush.xpose.msra.mxu2 %v89_v43 }
  0x3a   :  { %227 = vmatpush.msrb.mxu3 %v95_v23 }
  0x3b   :  { %126 = vmatpush.xpose.msra.mxu0 %v103_v13  ;;  %156 = vmatpush.xpose.msra.mxu1 %v72_v33 }
  0x3c   :  { %228 = vmatpush.msrb.mxu3 %v94_v26  ;;  %176 = vmatpush.xpose.msra.mxu2 %v88_v44 }
  0x3e   :  { %229 = vmatpush.msrb.mxu3 %v93_v30 }
  0x3f   :  { %127 = vmatpush.xpose.msra.mxu0 %v102_v17  ;;  %157 = vmatpush.xpose.msra.mxu1 %v71_v35 }
  0x40   :  { %230 = vmatpush.msrb.mxu3 %v92_v34  ;;  %177 = vmatpush.xpose.msra.mxu2 %v87_v45 }
  0x42   :  { %231 = vmatpush.msrb.mxu3 %v91_v37 }
  0x43   :  { %128 = vmatpush.xpose.msra.mxu0 %v101_v21  ;;  %158 = vmatpush.xpose.msra.mxu1 %v70_v36 }
  0x44   :  { %232 = vmatpush.msrb.mxu3 %v90_v41  ;;  %178 = vmatpush.xpose.msra.mxu2 %v86_v46 }
  0x46   :  { %233 = vmatpush.msrb.mxu3 %v89_v43 }
  0x47   :  { %129 = vmatpush.xpose.msra.mxu0 %v100_v25  ;;  %159 = vmatpush.xpose.msra.mxu1 %v69_v38 }
  0x48   :  { %234 = vmatpush.msrb.mxu3 %v88_v44  ;;  %179 = vmatpush.xpose.msra.mxu2 %v85_v47 }
  0x4a   :  { %235 = vmatpush.msrb.mxu3 %v87_v45 }
  0x4b   :  { %130 = vmatpush.xpose.msra.mxu0 %v99_v29  ;;  %160 = vmatpush.xpose.msra.mxu1 %v68_v40 }
  0x4c   :  { %236 = vmatpush.msrb.mxu3 %v86_v46  ;;  %180 = vmatpush.xpose.msra.mxu2 %v84_v48 }
  0x4e   :  { %131 = vmatmul.f32.vlgmr.msra.gmra.mxu0 %v65_v32  ;;  %237 = vmatpush.msrb.mxu3 %v85_v47 }
  0x4f   :  { %161 = vmatpush.xpose.msra.mxu1 %v67_v42 }
  0x50   :  { %238 = vmatpush.msrb.mxu3 %v84_v48  ;;  %181 = vmatpush.xpose.msra.mxu2 %v83_v49 }
  0x52   :  { %239 = vmatpush.msrb.mxu3 %v83_v49 }
  0x56   :  { %134 = vmatmul.f32.gmra.mxu0 %v66_v39 }
  0xcb   :  { %v132_v50 = vpop.f32.mrf.mxu0 }
  0xcc   :  { %162 = vmatmul.f32.vlgmr.msra.gmra.mxu1 %v132_v50 }
  0xd3   :  { %v135_v51 = vpop.f32.mrf.mxu0 }
  0xd4   :  { %182 = vmatmul.f32.vlgmr.msra.gmra.mxu2 %v135_v51 }
 0x149   :  { %v163_v53 = vpop.f32.mrf.mxu1 }
 0x14a   :  { %v164_v54 = vadd.f32 %v272_v52, %v163_v53 }
 0x14c   :  { %186 = vmax.xlane.f32.xlu0 %v164_v54 }
 0x157   :  { %v183_v56 = vpop.f32.mrf.mxu2 }
 0x158   :  { %v184_v57 = vadd.f32 %v273_v55, %v183_v56 }
 0x15a   :  { %188 = vmax.xlane.f32.xlu0 %v184_v57 }
 0x1bf   :  { %v187_v58 = vpop.xlane.xlu0 %186 }
 0x1c0   :  { %v190_v59 = vsub.f32 %v164_v54, %v187_v58 }
 0x1c2   :  { %v192_v60 = vmul.f32 1.442695, %v190_v59 }
 0x1c4   :  { %274 = vpow2.f32 %v192_v60 }
 0x1ca   :  { %v275_v61 = vpop.eup %274 }
 0x1cb   :  { %196 = vadd.xlane.f32.xlu1 %v275_v61 }
 0x1cd   :  { %v189_v62 = vpop.xlane.xlu0 %188 }
 0x1ce   :  { %v191_v63 = vsub.f32 %v184_v57, %v189_v62 }
 0x1d0   :  { %v194_v0 = vmul.f32 1.442695, %v191_v63 }
 0x1d2   :  { %276 = vpow2.f32 %v194_v0 }
 0x1d8   :  { %v277_v1 = vpop.eup %276 }
 0x1d9   :  { %198 = vadd.xlane.f32.xlu1 %v277_v1 }
 0x23e   :  { %v197_v2 = vpop.xlane.xlu1 %196 }
 0x23f   :  { %278 = vrcp.f32 %v197_v2 }
 0x245   :  { %v279_v3 = vpop.eup %278 }
 0x246   :  { %v202_v4 = vmul.f32 %v279_v3, %v275_v61 }
 0x248   :  { %220 = vmatmul.f32.vlgmr.msra.gmra.mxu3 %v202_v4 }
 0x24c   :  { %v199_v5 = vpop.xlane.xlu1 %198 }
 0x24d   :  { %280 = vrcp.f32 %v199_v5 }
 0x253   :  { %v281_v6 = vpop.eup %280 }
 0x254   :  { %v203_v7 = vmul.f32 %v281_v6, %v277_v1 }
 0x256   :  { %240 = vmatmul.f32.vlgmr.msrb.gmra.mxu3 %v203_v7 }
 0x2cb   :  { %v221_v8 = vpop.f32.mrf.mxu3 }
 0x2cc   :  { %244 = vst [vmem:[#allocation8] sm:$0xff] %v221_v8 }
 0x2d9   :  { %v241_v9 = vpop.f32.mrf.mxu3 }
 0x2da   :  { %245 = vst [vmem:[#allocation8 + $0x8] sm:$0xff] %v241_v9 }
 0x2db   :  { %258 = dma.vmem_to_hbm [thread:$0]  %s251_s7, 256, %s253_s10, [#allocation4], %s385_s23, %s385_s23, %s386_s24  }
 0x2dc   :  { %382 = dma.done.wait [#allocation4], 256  }
 0x2dd   :  { %383 = vsyncadd [#allocation4], 4294967040 }
 0x2de   :  { %263 = vsyncpa [#allocation3], 1 }
 0x2df   :  { %264 = vsyncpa [#allocation6], 1 }
 0x2e0   :  { %265 = vsyncpa [#allocation4], 1 }

</bundles_post_ra>
